<compile_context>
chip_gen: v7x
topology: tpu7x:2x2x1
jax: 0.10.0
libtpu: 0.0.40
codegen_flags: <defaults>
</compile_context>

<pallas_src>
import functools

import jax
import jax.numpy as jnp
from jax import lax
from jax.experimental import pallas as pl
from jax.experimental.pallas import tpu as pltpu

EPS = 1e-8  # gLN epsilon (AFRCNN GlobalLayerNorm default)


def _convnormact_kernel(x_ref, w_ref, p_ref, a_ref, o_ref, *, K, l_valid):
    # x_ref : (1, C_in, Lxp) bf16   zero-padded input (conv pad + lane pad)
    # w_ref : (K, C_out, C_in) bf16 conv weight, tap-major
    # p_ref : (C_out, 4) f32        [:,0]=gamma, [:,1]=beta, [:,2]=bias
    # a_ref : (1, 1) f32 in SMEM    PReLU slope
    # o_ref : (1, C_out, Lp)
    C_out = o_ref.shape[1]
    Lp = o_ref.shape[2]

    # --- Conv1d: K accumulated MXU matmuls over lane-shifted views of x ---
    acc = jnp.dot(w_ref[0], x_ref[0, :, 0:Lp],
                  preferred_element_type=jnp.float32)
    for k in range(1, K):
        acc = acc + jnp.dot(w_ref[k], x_ref[0, :, k:k + Lp],
                            preferred_element_type=jnp.float32)

    gamma = p_ref[:, 0:1]   # (C_out, 1) f32
    beta = p_ref[:, 1:2]
    bias = p_ref[:, 2:3]

    # --- gLN statistics over the valid (C_out, l_valid) region ---------------
    # Raw conv acc is exactly 0 in padded columns, except a narrow boundary
    # strip [l_valid, l_valid+K-1) fed by real samples; subtract it out.
    s = jnp.sum(acc)
    ss = jnp.sum(acc * acc)
    row = jnp.sum(acc, axis=1, keepdims=True)          # (C_out, 1)
    g_hi = min(l_valid + K - 1, Lp)
    if g_hi > l_valid:                                  # static
        g = acc[:, l_valid:g_hi]
        s = s - jnp.sum(g)
        ss = ss - jnp.sum(g * g)
        row = row - jnp.sum(g, axis=1, keepdims=True)

    # Fold the (f32) conv bias into the stats analytically: y = acc + bias_c.
    n = float(C_out * l_valid)
    lv = float(l_valid)
    sum_b = jnp.sum(bias)
    sum_b2 = jnp.sum(bias * bias)
    sum_y = s + lv * sum_b
    sum_y2 = ss + 2.0 * jnp.sum(bias * row) + lv * sum_b2
    mean = sum_y / n
    var = jnp.maximum(sum_y2 / n - mean * mean, 0.0)    # f32 guard
    rstd = lax.rsqrt(var + EPS)

    # --- fused (bias + gLN affine) + PReLU: single elementwise pass ----------
    scale = gamma * rstd                                # (C_out, 1)
    shift = (bias - mean) * scale + beta                # (C_out, 1)
    y = acc * scale + shift
    a = a_ref[0, 0]
    y = jnp.where(y >= 0, y, a * y)

    o_ref[0] = y.astype(o_ref.dtype)


def conv_norm_act(x, weight, bias, gamma, beta, prelu_a, kernel_size,
                  out_dtype=jnp.bfloat16):
    """x: [B, C_in, L] float32. weight: [C_out, C_in, K] (PyTorch Conv1d layout).
    Returns [B, C_out, L_out] in out_dtype (L_out == L for odd K, stride 1)."""
    B, C_in, L = x.shape
    C_out = weight.shape[0]
    K = int(kernel_size)
    pad = (K - 1) // 2
    L_out = L + 2 * pad - K + 1                       # == L for odd K
    Lp = max(128, ((L_out + 127) // 128) * 128)       # lane-dense time axis
    halo = ((K - 1 + 127) // 128) * 128 if K > 1 else 0
    Lxp = Lp + halo                                   # input tile width

    # --- wrapper staging: only a bf16 cast + zero pad (no im2col) ------------
    x_bf = x.astype(jnp.bfloat16)
    x_ext = jnp.pad(x_bf, ((0, 0), (0, 0), (pad, Lxp - L - pad)))

    w = jnp.transpose(weight, (2, 0, 1)).astype(jnp.bfloat16)     # (K,C_out,C_in)
    params = jnp.stack(
        [gamma, beta, bias, jnp.zeros_like(bias)], axis=1
    ).astype(jnp.float32)                                         # (C_out, 4)
    a2 = jnp.asarray(prelu_a, jnp.float32).reshape(1, 1)

    out_itemsize = jnp.dtype(out_dtype).itemsize

    # --- VMEM budget (conservative: double-buffered everything + f32 temps) --
    need = (2 * C_in * Lxp * 2                # x blocks (bf16, 2 buffers)
            + 2 * C_out * Lp * out_itemsize   # out blocks
            + 2 * K * C_out * C_in * 2        # weights (worst case 2 buffers)
            + 2 * C_out * Lp * 4              # f32 acc + one epilogue temp
            + (1 << 20))
    try:
        cap = int(pltpu.get_tpu_info().vmem_capacity_bytes * 3 // 4)
    except Exception:  # pragma: no cover - conservative cross-gen fallback
        cap = 48 << 20
    vmem_limit = int(min(need, cap)) if need > (16 << 20) else None
    # TODO(synk): for very long L on v7x (64 MiB VMEM), add a time-tile grid
    # axis with a two-phase gLN (phase 1: conv tiles + stat accumulation,
    # phase 2: scale/shift + PReLU) instead of whole-sample residency.

    cost = pl.CostEstimate(
        flops=2 * B * C_out * C_in * K * L_out,
        transcendentals=B,
        bytes_accessed=(x_ext.size * 2 + w.size * 2 + params.size * 4
                        + B * C_out * Lp * out_itemsize),
    )

    cp_kwargs = dict(dimension_semantics=("parallel",))
    if vmem_limit is not None:
        cp_kwargs["vmem_limit_bytes"] = vmem_limit

    def _build(single_buffer_invariants):
        def inv_spec(shape):
            zero_map = lambda b, _n=len(shape): (0,) * _n
            if single_buffer_invariants:
                return pl.BlockSpec(shape, zero_map, pipeline_mode=pl.Buffered(1))
            return pl.BlockSpec(shape, zero_map)

        grid_spec = pltpu.PrefetchScalarGridSpec(
            num_scalar_prefetch=0,
            grid=(B,),
            in_specs=[
                pl.BlockSpec((1, C_in, Lxp), lambda b: (b, 0, 0)),
                inv_spec((K, C_out, C_in)),
                inv_spec((C_out, 4)),
                pl.BlockSpec(memory_space=pltpu.MemorySpace.SMEM),
            ],
            out_specs=pl.BlockSpec((1, C_out, Lp), lambda b: (b, 0, 0)),
        )
        return pl.pallas_call(
            functools.partial(_convnormact_kernel, K=K, l_valid=L_out),
            out_shape=jax.ShapeDtypeStruct((B, C_out, Lp), out_dtype),
            grid_spec=grid_spec,
            compiler_params=pltpu.CompilerParams(**cp_kwargs),
            cost_estimate=cost,
        )

    try:
        out = jax.block_until_ready(_build(True)(x_ext, w, params, a2))
    except Exception:
        # Fallback: default double-buffering for grid-invariant operands.
        out = _build(False)(x_ext, w, params, a2)

    if L_out == Lp:
        return out
    return out[:, :, :L_out]


def conv_norm_act_ref(x, weight, bias, gamma, beta, prelu_a, kernel_size):
    """Pure-JAX f32 reference (mirrors PyTorch Conv1d + gLN + PReLU)."""
    pad = (kernel_size - 1) // 2
    y = lax.conv_general_dilated(
        x, weight,
        window_strides=(1,),
        padding=[(pad, pad)],
        dimension_numbers=("NCH", "OIH", "NCH"),
    ) + bias.reshape(1, -1, 1)
    mean = jnp.mean(y, axis=(1, 2), keepdims=True)
    var = jnp.mean((y - mean) ** 2, axis=(1, 2), keepdims=True)
    y = gamma.reshape(1, -1, 1) * (y - mean) / jnp.sqrt(var + EPS) \
        + beta.reshape(1, -1, 1)
    return jnp.where(y >= 0, y, prelu_a * y)


if __name__ == "__main__":
    # Small shapes consistent with the module's forward: x [B, N, L]
    B, C_in, C_out, L, K = 2, 4, 4, 16, 5

    key = jax.random.PRNGKey(0)
    kx, kw, kb = jax.random.split(key, 3)

    x = jax.random.normal(kx, (B, C_in, L), dtype=jnp.float32)

    # Deterministic parameter init (Conv1d kaiming-uniform-ish bounds).
    fan_in = C_in * K
    bound = 1.0 / (fan_in ** 0.5)
    weight = jax.random.uniform(kw, (C_out, C_in, K), jnp.float32, -bound, bound)
    bias = jax.random.uniform(kb, (C_out,), jnp.float32, -bound, bound)
    gamma = jnp.ones((C_out,), jnp.float32)    # gLN weight init
    beta = jnp.zeros((C_out,), jnp.float32)    # gLN bias init
    prelu_a = jnp.array(0.25, jnp.float32)     # PReLU default slope

    out = conv_norm_act(x, weight, bias, gamma, beta, prelu_a, K)
    out = jax.block_until_ready(out)

    ref = conv_norm_act_ref(x, weight, bias, gamma, beta, prelu_a, K)
    assert out.shape == (B, C_out, L)
    # Loosened tolerance: bf16 matmul inputs + bf16 output (f32 accumulation).
    assert jnp.allclose(out.astype(jnp.float32), ref, atol=6e-2, rtol=6e-2), \
        "mismatch vs JAX reference"

    print("KERNEL_OK")
</pallas_src>

<mosaic_0001>
module attributes {stable_mosaic.version = 11 : i64} {
  func.func @_convnormact_kernel(%arg0: i32, %arg1: memref<1x4x256xbf16, #tpu.memory_space<vmem>>, %arg2: memref<5x4x4xbf16, #tpu.memory_space<vmem>>, %arg3: memref<4x4xf32, #tpu.memory_space<vmem>>, %arg4: memref<1x1xf32, #tpu.memory_space<smem>>, %arg5: memref<1x4x128xbf16, #tpu.memory_space<vmem>>) attributes {dimension_semantics = [#tpu.dimension_semantics<parallel>], iteration_bounds = array<i64: 2>, scalar_prefetch = 0 : i64, scratch_operands = 0 : i64, tpu.core_type = #tpu.core_type<tc>, window_params = [{transform_indices = @transform_0, window_bounds = array<i64: 1, 4, 256>}, {pipeline_mode = #tpu.pipeline_mode<synchronous>, transform_indices = @transform_1, window_bounds = array<i64: 5, 4, 4>}, {pipeline_mode = #tpu.pipeline_mode<synchronous>, transform_indices = @transform_2, window_bounds = array<i64: 4, 4>}, {transform_indices = @transform_3, window_bounds = array<i64: 1, 1>}, {transform_indices = @transform_4, window_bounds = array<i64: 1, 4, 128>}]} {
    %c0 = arith.constant 0 : index
    %c0_0 = arith.constant 0 : index
    %c0_1 = arith.constant 0 : index
    %0 = vector.load %arg2[%c0, %c0_0, %c0_1] : memref<5x4x4xbf16, #tpu.memory_space<vmem>>, vector<1x4x4xbf16>
    %1 = vector.shape_cast %0 : vector<1x4x4xbf16> to vector<4x4xbf16>
    %c0_2 = arith.constant 0 : index
    %c0_3 = arith.constant 0 : index
    %c0_4 = arith.constant 0 : index
    %2 = vector.load %arg1[%c0_2, %c0_3, %c0_4] : memref<1x4x256xbf16, #tpu.memory_space<vmem>>, vector<1x4x128xbf16>
    %3 = vector.shape_cast %2 : vector<1x4x128xbf16> to vector<4x128xbf16>
    %cst = arith.constant dense<0.000000e+00> : vector<4x128xf32>
    %4 = tpu.matmul %1, %3, %cst {dimension_numbers = #tpu.dot_dimension_numbers<[1], [0], [0], [1], [0, 0, 1, 1], [], []>} : vector<4x4xbf16>, vector<4x128xbf16>, vector<4x128xf32> -> vector<4x128xf32>
    %c1 = arith.constant 1 : index
    %c0_5 = arith.constant 0 : index
    %c0_6 = arith.constant 0 : index
    %5 = vector.load %arg2[%c1, %c0_5, %c0_6] : memref<5x4x4xbf16, #tpu.memory_space<vmem>>, vector<1x4x4xbf16>
    %6 = vector.shape_cast %5 : vector<1x4x4xbf16> to vector<4x4xbf16>
    %c0_7 = arith.constant 0 : index
    %c0_8 = arith.constant 0 : index
    %c1_9 = arith.constant 1 : index
    %7 = vector.load %arg1[%c0_7, %c0_8, %c1_9] : memref<1x4x256xbf16, #tpu.memory_space<vmem>>, vector<1x4x128xbf16>
    %8 = vector.shape_cast %7 : vector<1x4x128xbf16> to vector<4x128xbf16>
    %cst_10 = arith.constant dense<0.000000e+00> : vector<4x128xf32>
    %9 = tpu.matmul %6, %8, %cst_10 {dimension_numbers = #tpu.dot_dimension_numbers<[1], [0], [0], [1], [0, 0, 1, 1], [], []>} : vector<4x4xbf16>, vector<4x128xbf16>, vector<4x128xf32> -> vector<4x128xf32>
    %10 = arith.addf %4, %9 : vector<4x128xf32>
    %c2 = arith.constant 2 : index
    %c0_11 = arith.constant 0 : index
    %c0_12 = arith.constant 0 : index
    %11 = vector.load %arg2[%c2, %c0_11, %c0_12] : memref<5x4x4xbf16, #tpu.memory_space<vmem>>, vector<1x4x4xbf16>
    %12 = vector.shape_cast %11 : vector<1x4x4xbf16> to vector<4x4xbf16>
    %c0_13 = arith.constant 0 : index
    %c0_14 = arith.constant 0 : index
    %c2_15 = arith.constant 2 : index
    %13 = vector.load %arg1[%c0_13, %c0_14, %c2_15] : memref<1x4x256xbf16, #tpu.memory_space<vmem>>, vector<1x4x128xbf16>
    %14 = vector.shape_cast %13 : vector<1x4x128xbf16> to vector<4x128xbf16>
    %cst_16 = arith.constant dense<0.000000e+00> : vector<4x128xf32>
    %15 = tpu.matmul %12, %14, %cst_16 {dimension_numbers = #tpu.dot_dimension_numbers<[1], [0], [0], [1], [0, 0, 1, 1], [], []>} : vector<4x4xbf16>, vector<4x128xbf16>, vector<4x128xf32> -> vector<4x128xf32>
    %16 = arith.addf %10, %15 : vector<4x128xf32>
    %c3 = arith.constant 3 : index
    %c0_17 = arith.constant 0 : index
    %c0_18 = arith.constant 0 : index
    %17 = vector.load %arg2[%c3, %c0_17, %c0_18] : memref<5x4x4xbf16, #tpu.memory_space<vmem>>, vector<1x4x4xbf16>
    %18 = vector.shape_cast %17 : vector<1x4x4xbf16> to vector<4x4xbf16>
    %c0_19 = arith.constant 0 : index
    %c0_20 = arith.constant 0 : index
    %c3_21 = arith.constant 3 : index
    %19 = vector.load %arg1[%c0_19, %c0_20, %c3_21] : memref<1x4x256xbf16, #tpu.memory_space<vmem>>, vector<1x4x128xbf16>
    %20 = vector.shape_cast %19 : vector<1x4x128xbf16> to vector<4x128xbf16>
    %cst_22 = arith.constant dense<0.000000e+00> : vector<4x128xf32>
    %21 = tpu.matmul %18, %20, %cst_22 {dimension_numbers = #tpu.dot_dimension_numbers<[1], [0], [0], [1], [0, 0, 1, 1], [], []>} : vector<4x4xbf16>, vector<4x128xbf16>, vector<4x128xf32> -> vector<4x128xf32>
    %22 = arith.addf %16, %21 : vector<4x128xf32>
    %c4 = arith.constant 4 : index
    %c0_23 = arith.constant 0 : index
    %c0_24 = arith.constant 0 : index
    %23 = vector.load %arg2[%c4, %c0_23, %c0_24] : memref<5x4x4xbf16, #tpu.memory_space<vmem>>, vector<1x4x4xbf16>
    %24 = vector.shape_cast %23 : vector<1x4x4xbf16> to vector<4x4xbf16>
    %c0_25 = arith.constant 0 : index
    %c0_26 = arith.constant 0 : index
    %c4_27 = arith.constant 4 : index
    %25 = vector.load %arg1[%c0_25, %c0_26, %c4_27] : memref<1x4x256xbf16, #tpu.memory_space<vmem>>, vector<1x4x128xbf16>
    %26 = vector.shape_cast %25 : vector<1x4x128xbf16> to vector<4x128xbf16>
    %cst_28 = arith.constant dense<0.000000e+00> : vector<4x128xf32>
    %27 = tpu.matmul %24, %26, %cst_28 {dimension_numbers = #tpu.dot_dimension_numbers<[1], [0], [0], [1], [0, 0, 1, 1], [], []>} : vector<4x4xbf16>, vector<4x128xbf16>, vector<4x128xf32> -> vector<4x128xf32>
    %28 = arith.addf %22, %27 : vector<4x128xf32>
    %c0_29 = arith.constant 0 : index
    %c0_30 = arith.constant 0 : index
    %29 = vector.load %arg3[%c0_29, %c0_30] : memref<4x4xf32, #tpu.memory_space<vmem>>, vector<4x1xf32>
    %c0_31 = arith.constant 0 : index
    %c1_32 = arith.constant 1 : index
    %30 = vector.load %arg3[%c0_31, %c1_32] : memref<4x4xf32, #tpu.memory_space<vmem>>, vector<4x1xf32>
    %c0_33 = arith.constant 0 : index
    %c2_34 = arith.constant 2 : index
    %31 = vector.load %arg3[%c0_33, %c2_34] : memref<4x4xf32, #tpu.memory_space<vmem>>, vector<4x1xf32>
    %32 = vector.shape_cast %28 : vector<4x128xf32> to vector<1x4x128xf32>
    %cst_35 = arith.constant dense<0.000000e+00> : vector<1xf32>
    %33 = vector.multi_reduction <add>, %32, %cst_35 [1, 2] : vector<1x4x128xf32> to vector<1xf32>
    %34 = vector.shape_cast %33 : vector<1xf32> to vector<1x1x1xf32>
    %35 = vector.extract %34[0, 0, 0] : f32 from vector<1x1x1xf32>
    %36 = arith.mulf %28, %28 : vector<4x128xf32>
    %37 = vector.shape_cast %36 : vector<4x128xf32> to vector<1x4x128xf32>
    %cst_36 = arith.constant dense<0.000000e+00> : vector<1xf32>
    %38 = vector.multi_reduction <add>, %37, %cst_36 [1, 2] : vector<1x4x128xf32> to vector<1xf32>
    %39 = vector.shape_cast %38 : vector<1xf32> to vector<1x1x1xf32>
    %40 = vector.extract %39[0, 0, 0] : f32 from vector<1x1x1xf32>
    %cst_37 = arith.constant dense<0.000000e+00> : vector<4xf32>
    %41 = vector.multi_reduction <add>, %28, %cst_37 [1] : vector<4x128xf32> to vector<4xf32>
    %42 = vector.shape_cast %41 : vector<4xf32> to vector<4x1xf32>
    %43 = vector.extract_strided_slice %28 {offsets = [0, 16], sizes = [4, 4], strides = [1, 1]} : vector<4x128xf32> to vector<4x4xf32>
    %44 = vector.shape_cast %43 : vector<4x4xf32> to vector<1x4x4xf32>
    %cst_38 = arith.constant dense<0.000000e+00> : vector<1xf32>
    %45 = vector.multi_reduction <add>, %44, %cst_38 [1, 2] : vector<1x4x4xf32> to vector<1xf32>
    %46 = vector.shape_cast %45 : vector<1xf32> to vector<1x1x1xf32>
    %47 = vector.extract %46[0, 0, 0] : f32 from vector<1x1x1xf32>
    %48 = arith.subf %35, %47 : f32
    %49 = arith.mulf %43, %43 : vector<4x4xf32>
    %50 = vector.shape_cast %49 : vector<4x4xf32> to vector<1x4x4xf32>
    %cst_39 = arith.constant dense<0.000000e+00> : vector<1xf32>
    %51 = vector.multi_reduction <add>, %50, %cst_39 [1, 2] : vector<1x4x4xf32> to vector<1xf32>
    %52 = vector.shape_cast %51 : vector<1xf32> to vector<1x1x1xf32>
    %53 = vector.extract %52[0, 0, 0] : f32 from vector<1x1x1xf32>
    %54 = arith.subf %40, %53 : f32
    %cst_40 = arith.constant dense<0.000000e+00> : vector<4xf32>
    %55 = vector.multi_reduction <add>, %43, %cst_40 [1] : vector<4x4xf32> to vector<4xf32>
    %56 = vector.shape_cast %55 : vector<4xf32> to vector<4x1xf32>
    %57 = arith.subf %42, %56 : vector<4x1xf32>
    %58 = vector.shape_cast %31 : vector<4x1xf32> to vector<1x4x1xf32>
    %cst_41 = arith.constant dense<0.000000e+00> : vector<1xf32>
    %59 = vector.multi_reduction <add>, %58, %cst_41 [1, 2] : vector<1x4x1xf32> to vector<1xf32>
    %60 = vector.shape_cast %59 : vector<1xf32> to vector<1x1x1xf32>
    %61 = vector.extract %60[0, 0, 0] : f32 from vector<1x1x1xf32>
    %62 = arith.mulf %31, %31 : vector<4x1xf32>
    %63 = vector.shape_cast %62 : vector<4x1xf32> to vector<1x4x1xf32>
    %cst_42 = arith.constant dense<0.000000e+00> : vector<1xf32>
    %64 = vector.multi_reduction <add>, %63, %cst_42 [1, 2] : vector<1x4x1xf32> to vector<1xf32>
    %65 = vector.shape_cast %64 : vector<1xf32> to vector<1x1x1xf32>
    %66 = vector.extract %65[0, 0, 0] : f32 from vector<1x1x1xf32>
    %cst_43 = arith.constant 1.600000e+01 : f32
    %67 = arith.mulf %cst_43, %61 : f32
    %68 = arith.addf %48, %67 : f32
    %69 = arith.mulf %31, %57 : vector<4x1xf32>
    %70 = vector.shape_cast %69 : vector<4x1xf32> to vector<1x4x1xf32>
    %cst_44 = arith.constant dense<0.000000e+00> : vector<1xf32>
    %71 = vector.multi_reduction <add>, %70, %cst_44 [1, 2] : vector<1x4x1xf32> to vector<1xf32>
    %72 = vector.shape_cast %71 : vector<1xf32> to vector<1x1x1xf32>
    %73 = vector.extract %72[0, 0, 0] : f32 from vector<1x1x1xf32>
    %cst_45 = arith.constant 2.000000e+00 : f32
    %74 = arith.mulf %cst_45, %73 : f32
    %75 = arith.addf %54, %74 : f32
    %cst_46 = arith.constant 1.600000e+01 : f32
    %76 = arith.mulf %cst_46, %66 : f32
    %77 = arith.addf %75, %76 : f32
    %cst_47 = arith.constant 6.400000e+01 : f32
    %78 = arith.divf %68, %cst_47 : f32
    %cst_48 = arith.constant 6.400000e+01 : f32
    %79 = arith.divf %77, %cst_48 : f32
    %80 = arith.mulf %78, %78 : f32
    %81 = arith.subf %79, %80 : f32
    %cst_49 = arith.constant 0.000000e+00 : f32
    %82 = arith.maximumf %81, %cst_49 : f32
    %cst_50 = arith.constant 9.99999993E-9 : f32
    %83 = arith.addf %82, %cst_50 : f32
    %84 = math.rsqrt %83 : f32
    %85 = vector.broadcast %84 : f32 to vector<4x1xf32>
    %86 = arith.mulf %29, %85 : vector<4x1xf32>
    %87 = vector.broadcast %78 : f32 to vector<4x1xf32>
    %88 = arith.subf %31, %87 : vector<4x1xf32>
    %89 = arith.mulf %88, %86 : vector<4x1xf32>
    %90 = arith.addf %89, %30 : vector<4x1xf32>
    %91 = vector.broadcast %86 : vector<4x1xf32> to vector<4x128xf32>
    %92 = arith.mulf %28, %91 : vector<4x128xf32>
    %93 = vector.broadcast %90 : vector<4x1xf32> to vector<4x128xf32>
    %94 = arith.addf %92, %93 : vector<4x128xf32>
    %c0_51 = arith.constant 0 : index
    %c0_52 = arith.constant 0 : index
    %95 = memref.load %arg4[%c0_51, %c0_52] : memref<1x1xf32, #tpu.memory_space<smem>>
    %cst_53 = arith.constant 0.000000e+00 : f32
    %96 = vector.broadcast %cst_53 : f32 to vector<4x128xf32>
    %97 = arith.cmpf oge, %94, %96 : vector<4x128xf32>
    %98 = vector.broadcast %95 : f32 to vector<4x128xf32>
    %99 = arith.mulf %98, %94 : vector<4x128xf32>
    %100 = arith.select %97, %94, %99 : vector<4x128xi1>, vector<4x128xf32>
    %101 = arith.truncf %100 : vector<4x128xf32> to vector<4x128xbf16>
    %c0_54 = arith.constant 0 : index
    %c0_55 = arith.constant 0 : index
    %c0_56 = arith.constant 0 : index
    %102 = vector.load %arg5[%c0_54, %c0_55, %c0_56] : memref<1x4x128xbf16, #tpu.memory_space<vmem>>, vector<1x4x128xbf16>
    %103 = vector.shape_cast %102 : vector<1x4x128xbf16> to vector<4x128xbf16>
    %104 = vector.shape_cast %101 : vector<4x128xbf16> to vector<1x4x128xbf16>
    tpu.vector_store %arg5[%c0_54, %c0_55, %c0_56], %104 {strides = array<i32>} : memref<1x4x128xbf16, #tpu.memory_space<vmem>>, vector<1x4x128xbf16>,
    return
  }
  func.func @transform_0(%arg0: i32) -> (i32, i32, i32) {
    %c0_i32 = arith.constant 0 : i32
    %c0_i32_0 = arith.constant 0 : i32
    %c0_i32_1 = arith.constant 0 : i32
    return %arg0, %c0_i32, %c0_i32_0 : i32, i32, i32
  }
  func.func @transform_1(%arg0: i32) -> (i32, i32, i32) {
    %c0_i32 = arith.constant 0 : i32
    %c0_i32_0 = arith.constant 0 : i32
    %c0_i32_1 = arith.constant 0 : i32
    %c0_i32_2 = arith.constant 0 : i32
    return %c0_i32, %c0_i32_0, %c0_i32_1 : i32, i32, i32
  }
  func.func @transform_2(%arg0: i32) -> (i32, i32) {
    %c0_i32 = arith.constant 0 : i32
    %c0_i32_0 = arith.constant 0 : i32
    %c0_i32_1 = arith.constant 0 : i32
    return %c0_i32, %c0_i32_0 : i32, i32
  }
  func.func @transform_3(%arg0: i32) -> (i32, i32) {
    %c0_i32 = arith.constant 0 : i32
    %c0_i32_0 = arith.constant 0 : i32
    %c0_i32_1 = arith.constant 0 : i32
    return %c0_i32, %c0_i32_0 : i32, i32
  }
  func.func @transform_4(%arg0: i32) -> (i32, i32, i32) {
    %c0_i32 = arith.constant 0 : i32
    %c0_i32_0 = arith.constant 0 : i32
    %c0_i32_1 = arith.constant 0 : i32
    return %arg0, %c0_i32, %c0_i32_0 : i32, i32, i32
  }
}

module attributes {stable_mosaic.version = 11 : i64} {
  func.func @_convnormact_kernel(%arg0: i32, %arg1: memref<1x4x256xbf16, #tpu.memory_space<vmem>>, %arg2: memref<5x4x4xbf16, #tpu.memory_space<vmem>>, %arg3: memref<4x4xf32, #tpu.memory_space<vmem>>, %arg4: memref<1x1xf32, #tpu.memory_space<smem>>, %arg5: memref<1x4x128xbf16, #tpu.memory_space<vmem>>) attributes {dimension_semantics = [#tpu.dimension_semantics<parallel>], iteration_bounds = array<i64: 2>, scalar_prefetch = 0 : i64, scratch_operands = 0 : i64, tpu.core_type = #tpu.core_type<tc>, window_params = [{transform_indices = @transform_0, window_bounds = array<i64: 1, 4, 256>}, {pipeline_mode = #tpu.pipeline_mode<synchronous>, transform_indices = @transform_1, window_bounds = array<i64: 5, 4, 4>}, {pipeline_mode = #tpu.pipeline_mode<synchronous>, transform_indices = @transform_2, window_bounds = array<i64: 4, 4>}, {transform_indices = @transform_3, window_bounds = array<i64: 1, 1>}, {transform_indices = @transform_4, window_bounds = array<i64: 1, 4, 128>}]} {
    %c0 = arith.constant 0 : index
    %c0_0 = arith.constant 0 : index
    %c0_1 = arith.constant 0 : index
    %0 = vector.load %arg2[%c0, %c0_0, %c0_1] : memref<5x4x4xbf16, #tpu.memory_space<vmem>>, vector<1x4x4xbf16>
    %1 = vector.shape_cast %0 : vector<1x4x4xbf16> to vector<4x4xbf16>
    %c0_2 = arith.constant 0 : index
    %c0_3 = arith.constant 0 : index
    %c0_4 = arith.constant 0 : index
    %2 = vector.load %arg1[%c0_2, %c0_3, %c0_4] : memref<1x4x256xbf16, #tpu.memory_space<vmem>>, vector<1x4x128xbf16>
    %3 = vector.shape_cast %2 : vector<1x4x128xbf16> to vector<4x128xbf16>
    %cst = arith.constant dense<0.000000e+00> : vector<4x128xf32>
    %4 = tpu.matmul %1, %3, %cst {dimension_numbers = #tpu.dot_dimension_numbers<[1], [0], [0], [1], [0, 0, 1, 1], [], []>} : vector<4x4xbf16>, vector<4x128xbf16>, vector<4x128xf32> -> vector<4x128xf32>
    %c1 = arith.constant 1 : index
    %c0_5 = arith.constant 0 : index
    %c0_6 = arith.constant 0 : index
    %5 = vector.load %arg2[%c1, %c0_5, %c0_6] : memref<5x4x4xbf16, #tpu.memory_space<vmem>>, vector<1x4x4xbf16>
    %6 = vector.shape_cast %5 : vector<1x4x4xbf16> to vector<4x4xbf16>
    %c0_7 = arith.constant 0 : index
    %c0_8 = arith.constant 0 : index
    %c1_9 = arith.constant 1 : index
    %7 = vector.load %arg1[%c0_7, %c0_8, %c1_9] : memref<1x4x256xbf16, #tpu.memory_space<vmem>>, vector<1x4x128xbf16>
    %8 = vector.shape_cast %7 : vector<1x4x128xbf16> to vector<4x128xbf16>
    %cst_10 = arith.constant dense<0.000000e+00> : vector<4x128xf32>
    %9 = tpu.matmul %6, %8, %cst_10 {dimension_numbers = #tpu.dot_dimension_numbers<[1], [0], [0], [1], [0, 0, 1, 1], [], []>} : vector<4x4xbf16>, vector<4x128xbf16>, vector<4x128xf32> -> vector<4x128xf32>
    %10 = arith.addf %4, %9 : vector<4x128xf32>
    %c2 = arith.constant 2 : index
    %c0_11 = arith.constant 0 : index
    %c0_12 = arith.constant 0 : index
    %11 = vector.load %arg2[%c2, %c0_11, %c0_12] : memref<5x4x4xbf16, #tpu.memory_space<vmem>>, vector<1x4x4xbf16>
    %12 = vector.shape_cast %11 : vector<1x4x4xbf16> to vector<4x4xbf16>
    %c0_13 = arith.constant 0 : index
    %c0_14 = arith.constant 0 : index
    %c2_15 = arith.constant 2 : index
    %13 = vector.load %arg1[%c0_13, %c0_14, %c2_15] : memref<1x4x256xbf16, #tpu.memory_space<vmem>>, vector<1x4x128xbf16>
    %14 = vector.shape_cast %13 : vector<1x4x128xbf16> to vector<4x128xbf16>
    %cst_16 = arith.constant dense<0.000000e+00> : vector<4x128xf32>
    %15 = tpu.matmul %12, %14, %cst_16 {dimension_numbers = #tpu.dot_dimension_numbers<[1], [0], [0], [1], [0, 0, 1, 1], [], []>} : vector<4x4xbf16>, vector<4x128xbf16>, vector<4x128xf32> -> vector<4x128xf32>
    %16 = arith.addf %10, %15 : vector<4x128xf32>
    %c3 = arith.constant 3 : index
    %c0_17 = arith.constant 0 : index
    %c0_18 = arith.constant 0 : index
    %17 = vector.load %arg2[%c3, %c0_17, %c0_18] : memref<5x4x4xbf16, #tpu.memory_space<vmem>>, vector<1x4x4xbf16>
    %18 = vector.shape_cast %17 : vector<1x4x4xbf16> to vector<4x4xbf16>
    %c0_19 = arith.constant 0 : index
    %c0_20 = arith.constant 0 : index
    %c3_21 = arith.constant 3 : index
    %19 = vector.load %arg1[%c0_19, %c0_20, %c3_21] : memref<1x4x256xbf16, #tpu.memory_space<vmem>>, vector<1x4x128xbf16>
    %20 = vector.shape_cast %19 : vector<1x4x128xbf16> to vector<4x128xbf16>
    %cst_22 = arith.constant dense<0.000000e+00> : vector<4x128xf32>
    %21 = tpu.matmul %18, %20, %cst_22 {dimension_numbers = #tpu.dot_dimension_numbers<[1], [0], [0], [1], [0, 0, 1, 1], [], []>} : vector<4x4xbf16>, vector<4x128xbf16>, vector<4x128xf32> -> vector<4x128xf32>
    %22 = arith.addf %16, %21 : vector<4x128xf32>
    %c4 = arith.constant 4 : index
    %c0_23 = arith.constant 0 : index
    %c0_24 = arith.constant 0 : index
    %23 = vector.load %arg2[%c4, %c0_23, %c0_24] : memref<5x4x4xbf16, #tpu.memory_space<vmem>>, vector<1x4x4xbf16>
    %24 = vector.shape_cast %23 : vector<1x4x4xbf16> to vector<4x4xbf16>
    %c0_25 = arith.constant 0 : index
    %c0_26 = arith.constant 0 : index
    %c4_27 = arith.constant 4 : index
    %25 = vector.load %arg1[%c0_25, %c0_26, %c4_27] : memref<1x4x256xbf16, #tpu.memory_space<vmem>>, vector<1x4x128xbf16>
    %26 = vector.shape_cast %25 : vector<1x4x128xbf16> to vector<4x128xbf16>
    %cst_28 = arith.constant dense<0.000000e+00> : vector<4x128xf32>
    %27 = tpu.matmul %24, %26, %cst_28 {dimension_numbers = #tpu.dot_dimension_numbers<[1], [0], [0], [1], [0, 0, 1, 1], [], []>} : vector<4x4xbf16>, vector<4x128xbf16>, vector<4x128xf32> -> vector<4x128xf32>
    %28 = arith.addf %22, %27 : vector<4x128xf32>
    %c0_29 = arith.constant 0 : index
    %c0_30 = arith.constant 0 : index
    %29 = vector.load %arg3[%c0_29, %c0_30] : memref<4x4xf32, #tpu.memory_space<vmem>>, vector<4x1xf32>
    %c0_31 = arith.constant 0 : index
    %c1_32 = arith.constant 1 : index
    %30 = vector.load %arg3[%c0_31, %c1_32] : memref<4x4xf32, #tpu.memory_space<vmem>>, vector<4x1xf32>
    %c0_33 = arith.constant 0 : index
    %c2_34 = arith.constant 2 : index
    %31 = vector.load %arg3[%c0_33, %c2_34] : memref<4x4xf32, #tpu.memory_space<vmem>>, vector<4x1xf32>
    %32 = vector.shape_cast %28 : vector<4x128xf32> to vector<1x4x128xf32>
    %cst_35 = arith.constant dense<0.000000e+00> : vector<1xf32>
    %33 = vector.multi_reduction <add>, %32, %cst_35 [1, 2] : vector<1x4x128xf32> to vector<1xf32>
    %34 = vector.shape_cast %33 : vector<1xf32> to vector<1x1x1xf32>
    %35 = vector.extract %34[0, 0, 0] : f32 from vector<1x1x1xf32>
    %36 = arith.mulf %28, %28 : vector<4x128xf32>
    %37 = vector.shape_cast %36 : vector<4x128xf32> to vector<1x4x128xf32>
    %cst_36 = arith.constant dense<0.000000e+00> : vector<1xf32>
    %38 = vector.multi_reduction <add>, %37, %cst_36 [1, 2] : vector<1x4x128xf32> to vector<1xf32>
    %39 = vector.shape_cast %38 : vector<1xf32> to vector<1x1x1xf32>
    %40 = vector.extract %39[0, 0, 0] : f32 from vector<1x1x1xf32>
    %cst_37 = arith.constant dense<0.000000e+00> : vector<4xf32>
    %41 = vector.multi_reduction <add>, %28, %cst_37 [1] : vector<4x128xf32> to vector<4xf32>
    %42 = vector.shape_cast %41 : vector<4xf32> to vector<4x1xf32>
    %43 = vector.extract_strided_slice %28 {offsets = [0, 16], sizes = [4, 4], strides = [1, 1]} : vector<4x128xf32> to vector<4x4xf32>
    %44 = vector.shape_cast %43 : vector<4x4xf32> to vector<1x4x4xf32>
    %cst_38 = arith.constant dense<0.000000e+00> : vector<1xf32>
    %45 = vector.multi_reduction <add>, %44, %cst_38 [1, 2] : vector<1x4x4xf32> to vector<1xf32>
    %46 = vector.shape_cast %45 : vector<1xf32> to vector<1x1x1xf32>
    %47 = vector.extract %46[0, 0, 0] : f32 from vector<1x1x1xf32>
    %48 = arith.subf %35, %47 : f32
    %49 = arith.mulf %43, %43 : vector<4x4xf32>
    %50 = vector.shape_cast %49 : vector<4x4xf32> to vector<1x4x4xf32>
    %cst_39 = arith.constant dense<0.000000e+00> : vector<1xf32>
    %51 = vector.multi_reduction <add>, %50, %cst_39 [1, 2] : vector<1x4x4xf32> to vector<1xf32>
    %52 = vector.shape_cast %51 : vector<1xf32> to vector<1x1x1xf32>
    %53 = vector.extract %52[0, 0, 0] : f32 from vector<1x1x1xf32>
    %54 = arith.subf %40, %53 : f32
    %cst_40 = arith.constant dense<0.000000e+00> : vector<4xf32>
    %55 = vector.multi_reduction <add>, %43, %cst_40 [1] : vector<4x4xf32> to vector<4xf32>
    %56 = vector.shape_cast %55 : vector<4xf32> to vector<4x1xf32>
    %57 = arith.subf %42, %56 : vector<4x1xf32>
    %58 = vector.shape_cast %31 : vector<4x1xf32> to vector<1x4x1xf32>
    %cst_41 = arith.constant dense<0.000000e+00> : vector<1xf32>
    %59 = vector.multi_reduction <add>, %58, %cst_41 [1, 2] : vector<1x4x1xf32> to vector<1xf32>
    %60 = vector.shape_cast %59 : vector<1xf32> to vector<1x1x1xf32>
    %61 = vector.extract %60[0, 0, 0] : f32 from vector<1x1x1xf32>
    %62 = arith.mulf %31, %31 : vector<4x1xf32>
    %63 = vector.shape_cast %62 : vector<4x1xf32> to vector<1x4x1xf32>
    %cst_42 = arith.constant dense<0.000000e+00> : vector<1xf32>
    %64 = vector.multi_reduction <add>, %63, %cst_42 [1, 2] : vector<1x4x1xf32> to vector<1xf32>
    %65 = vector.shape_cast %64 : vector<1xf32> to vector<1x1x1xf32>
    %66 = vector.extract %65[0, 0, 0] : f32 from vector<1x1x1xf32>
    %cst_43 = arith.constant 1.600000e+01 : f32
    %67 = arith.mulf %cst_43, %61 : f32
    %68 = arith.addf %48, %67 : f32
    %69 = arith.mulf %31, %57 : vector<4x1xf32>
    %70 = vector.shape_cast %69 : vector<4x1xf32> to vector<1x4x1xf32>
    %cst_44 = arith.constant dense<0.000000e+00> : vector<1xf32>
    %71 = vector.multi_reduction <add>, %70, %cst_44 [1, 2] : vector<1x4x1xf32> to vector<1xf32>
    %72 = vector.shape_cast %71 : vector<1xf32> to vector<1x1x1xf32>
    %73 = vector.extract %72[0, 0, 0] : f32 from vector<1x1x1xf32>
    %cst_45 = arith.constant 2.000000e+00 : f32
    %74 = arith.mulf %cst_45, %73 : f32
    %75 = arith.addf %54, %74 : f32
    %cst_46 = arith.constant 1.600000e+01 : f32
    %76 = arith.mulf %cst_46, %66 : f32
    %77 = arith.addf %75, %76 : f32
    %cst_47 = arith.constant 6.400000e+01 : f32
    %78 = arith.divf %68, %cst_47 : f32
    %cst_48 = arith.constant 6.400000e+01 : f32
    %79 = arith.divf %77, %cst_48 : f32
    %80 = arith.mulf %78, %78 : f32
    %81 = arith.subf %79, %80 : f32
    %cst_49 = arith.constant 0.000000e+00 : f32
    %82 = arith.maximumf %81, %cst_49 : f32
    %cst_50 = arith.constant 9.99999993E-9 : f32
    %83 = arith.addf %82, %cst_50 : f32
    %84 = math.rsqrt %83 : f32
    %85 = vector.broadcast %84 : f32 to vector<4x1xf32>
    %86 = arith.mulf %29, %85 : vector<4x1xf32>
    %87 = vector.broadcast %78 : f32 to vector<4x1xf32>
    %88 = arith.subf %31, %87 : vector<4x1xf32>
    %89 = arith.mulf %88, %86 : vector<4x1xf32>
    %90 = arith.addf %89, %30 : vector<4x1xf32>
    %91 = vector.broadcast %86 : vector<4x1xf32> to vector<4x128xf32>
    %92 = arith.mulf %28, %91 : vector<4x128xf32>
    %93 = vector.broadcast %90 : vector<4x1xf32> to vector<4x128xf32>
    %94 = arith.addf %92, %93 : vector<4x128xf32>
    %c0_51 = arith.constant 0 : index
    %c0_52 = arith.constant 0 : index
    %95 = memref.load %arg4[%c0_51, %c0_52] : memref<1x1xf32, #tpu.memory_space<smem>>
    %cst_53 = arith.constant 0.000000e+00 : f32
    %96 = vector.broadcast %cst_53 : f32 to vector<4x128xf32>
    %97 = arith.cmpf oge, %94, %96 : vector<4x128xf32>
    %98 = vector.broadcast %95 : f32 to vector<4x128xf32>
    %99 = arith.mulf %98, %94 : vector<4x128xf32>
    %100 = arith.select %97, %94, %99 : vector<4x128xi1>, vector<4x128xf32>
    %101 = arith.truncf %100 : vector<4x128xf32> to vector<4x128xbf16>
    %c0_54 = arith.constant 0 : index
    %c0_55 = arith.constant 0 : index
    %c0_56 = arith.constant 0 : index
    %102 = vector.load %arg5[%c0_54, %c0_55, %c0_56] : memref<1x4x128xbf16, #tpu.memory_space<vmem>>, vector<1x4x128xbf16>
    %103 = vector.shape_cast %102 : vector<1x4x128xbf16> to vector<4x128xbf16>
    %104 = vector.shape_cast %101 : vector<4x128xbf16> to vector<1x4x128xbf16>
    tpu.vector_store %arg5[%c0_54, %c0_55, %c0_56], %104 {strides = array<i32>} : memref<1x4x128xbf16, #tpu.memory_space<vmem>>, vector<1x4x128xbf16>,
    return
  }
  func.func @transform_0(%arg0: i32) -> (i32, i32, i32) {
    %c0_i32 = arith.constant 0 : i32
    %c0_i32_0 = arith.constant 0 : i32
    %c0_i32_1 = arith.constant 0 : i32
    return %arg0, %c0_i32, %c0_i32_0 : i32, i32, i32
  }
  func.func @transform_1(%arg0: i32) -> (i32, i32, i32) {
    %c0_i32 = arith.constant 0 : i32
    %c0_i32_0 = arith.constant 0 : i32
    %c0_i32_1 = arith.constant 0 : i32
    %c0_i32_2 = arith.constant 0 : i32
    return %c0_i32, %c0_i32_0, %c0_i32_1 : i32, i32, i32
  }
  func.func @transform_2(%arg0: i32) -> (i32, i32) {
    %c0_i32 = arith.constant 0 : i32
    %c0_i32_0 = arith.constant 0 : i32
    %c0_i32_1 = arith.constant 0 : i32
    return %c0_i32, %c0_i32_0 : i32, i32
  }
  func.func @transform_3(%arg0: i32) -> (i32, i32) {
    %c0_i32 = arith.constant 0 : i32
    %c0_i32_0 = arith.constant 0 : i32
    %c0_i32_1 = arith.constant 0 : i32
    return %c0_i32, %c0_i32_0 : i32, i32
  }
  func.func @transform_4(%arg0: i32) -> (i32, i32, i32) {
    %c0_i32 = arith.constant 0 : i32
    %c0_i32_0 = arith.constant 0 : i32
    %c0_i32_1 = arith.constant 0 : i32
    return %arg0, %c0_i32, %c0_i32_0 : i32, i32, i32
  }
}

</mosaic_0001>

<bundles_post_ra>
// kernel: tpu_custom_call.1
= control target key start
LH: loop header
LB: loop body
LE: loop exit
PB: predicated region body
PF: predicated region fallthrough
CT: control target
= control target key end

     0   :  { %s1154_s0 = inlined_call_operand.vmem [shape: bf16[2,4,256], index: 0, kind: input, shape index: {}]   ;;  %s1155_s1 = inlined_call_operand.vmem [shape: bf16[5,4,4], index: 1, kind: input, shape index: {}]   ;;  %s1156_s2 = inlined_call_operand.vmem [shape: f32[4,4], index: 2, kind: input, shape index: {}]   ;;  %s1157_s3 = inlined_call_operand.<no memory space> [shape: f32[1,1], index: 3, kind: input, shape index: {}]   ;;  %s1158_s4 = inlined_call_operand.hbm [shape: bf16[2,4,128], index: 4, kind: output, shape index: {}]  }
   0x1   :  { %1159 = sst [smem:[#allocation7_spill]] %s1154_s0 }
   0x2   :  { %1160 = sst [smem:[#allocation8_spill]] %s1155_s1 }
   0x3   :  { %1161 = sst [smem:[#allocation9_spill]] %s1156_s2 }
   0x4   :  { %9 = sst [smem:[#allocation2]] %s1157_s3 }
   0x5   :  { %10 = vsyncpa [#allocation4], 0 }
   0x6   :  { %12 = vsyncpa [#allocation4 + $0x1], 0  ;;  %s985_s17 = smov 0   ;;  %s987_s18 = smov 0  }
   0x7   :  { %s989_s19 = smov 0   ;;  %s991_s20 = smov 0  }
   0x8 LB: > { %s1006_s3 = sadd.s32 4294967295, %s942_s20   ;;  %s730_s21 = sadd.s32 4294967294, %s942_s20   ;;  %s942_s20 = sphi %s991_s20, %s1172_s20   ;;  %s938_s19 = sphi %s989_s19, %s1171_s19   ;;  %s934_s18 = sphi %s987_s18, %s1170_s18   ;;  %s930_s17 = sphi %s985_s17, %s1169_s17  }
   0x9   : > { %s1010_s22 = sadd.s32 1, %s942_s20   ;;  %s114_s23 = sadd.s32 1, %s938_s19 }
   0xa   : > { %s111_s24 = ssub.s32 %s942_s20, %s1010_s22  ;;  %p124_p0 = scmp.ne.s32.totalorder %s938_s19, %s934_s18 }
   0xb   : > { %p112_p1 = scmp.eq.s32.totalorder %s111_s24, 0  ;;  %p125_p2 = scmp.eq.s32.totalorder %s1006_s3, 1 }
   0xc   : > { %p130_p3 = scmp.ne.s32.totalorder %s934_s18, %s930_s17  ;;  %p131_p4 = scmp.eq.s32.totalorder %s730_s21, 1 }
   0xd   : > { %s1021_s25 = scalar_select %p112_p1, %s938_s19, %s114_s23  }
   0xe   : > { %p1023_p5 = por %p125_p2, %p124_p0  ;;  %p1027_p6 = por %p131_p4, %p130_p3 }
   0xf   : > { %1162 = sst [smem:[#allocation6_spill]] %s1021_s25  ;;  %p733_p7 = scmp.ge.s32.totalorder %s942_s20, 1 }
  0x10   : > { %p166_p8 = scmp.lt.s32.totalorder %s942_s20, 3 }
  0x12   : > { %p167_p9 = pnand %p733_p7, %p166_p8 }
  0x13   : > { %p192_p10 = scmp.lt.s32.totalorder (!%p167_p9), %s1006_s3, 1  ;;  %v944_v0 = vmov (!%p167_p9), 0.0   ;;  %vm945_vm0 = vmmov (!%p167_p9), 0   ;;  %s1165_s0 = sld [smem:[#allocation7_spill]] (!%p167_p9)  ;;  %vm216_vm1 = vcmask (!%p167_p9), 1039360   ;;  %vm328_vm2 = vcmask (!%p167_p9), 1031168  }
  0x14   : > { %170 = sbr.rel (%p167_p9) target bundleno = 1322 (0x52a), region = 36  ;;  %765 = vmatprep.subr.bf16.mxu1 (!%p167_p9), %v944_v0  ;;  %777 = vmatprep.subr.bf16.mxu0 (!%p167_p9), %v944_v0  ;;  %s946_s7 = smov (!%p167_p9), 126   ;;  %vm222_vm3 = vcmask (!%p167_p9), 1041408   ;;  %vm393_vm4 = vcmask (!%p167_p9), 1022976   ;;  %vm218_vm5 = vcmask (!%p167_p9), 31744   ;;  %vm458_vm6 = vcmask (!%p167_p9), 1014784  }
  0x15   : > { %767 = vmatprep.mubr.msk.bf16.mxu1 (!%p167_p9), %vm945_vm0, %v944_v0  ;;  %779 = vmatprep.mubr.msk.bf16.mxu0 (!%p167_p9), %vm945_vm0, %v944_v0  ;;  %s947_s8 = smov (!%p167_p9), 127   ;;  %s948_s9 = smov (!%p167_p9), 125   ;;  %vm508_vm7 = vcmask (!%p167_p9), 1043456   ;;  %vm534_vm8 = vcmask (!%p167_p9), 27648   ;;  %vm566_vm9 = vcmask (!%p167_p9), 3072  }
  0x16   : > { %s949_s10 = smov (!%p167_p9), 124   ;;  %s1166_s1 = sld [smem:[#allocation8_spill]] (!%p167_p9) }
  0x17   : > { %s1167_s2 = sld [smem:[#allocation9_spill]] (!%p167_p9) }
  0x1b   : > { %s193_s28 = scalar_select %p192_p10, %s1006_s3, 1 }
  0x1c   : > { %v737_v12 = vld [vmem:[%s1166_s1 + $0x2] sm:$0x3]  ;;  %v741_v13 = vld [vmem:[%s1166_s1 + $0x4] sm:$0x3]  ;;  %v198_v22 = vld [vmem:[%s1166_s1] sm:$0x3] }
  0x1d   : > { %s754_s29 = sshll.u32 %s193_s28, 2  ;;  %v744_v23 = vld [vmem:[%s1166_s1 + $0x6] sm:$0x3]  ;;  %v747_v25 = vld [vmem:[%s1166_s1 + $0x8] sm:$0x3]  ;;  %s953_s1 = smov 0.0  }
  0x1e   : > { %s196_s6 = scalar_lea.vmem %s1165_s0, %s754_s29  ;;  %s950_s29 = smov 112   ;;  %v1087_v36 = vld [vmem:[%s1167_s2] sm:$0xf] }
  0x1f   : > { %v742_v1 = vld.sshfl [vmem:[%s196_s6] sm:$0x33 pattern:$0x76325410]  ;;  %v577_v37 = vmul.f32 %v1087_v36, %v1087_v36 }
  0x20   : > { %324 = vrot.lane.b32.xlu0 %v742_v1, %s946_s7  ;;  %v323_v2 = vcombine.high %v742_v1, %v742_v1  ;;  %212 = vrot.lane.b32.xlu1 %v742_v1, %s947_s8  ;;  %v199_v9 = vld [vmem:[%s196_s6] sm:$0x3]  ;;  %s951_s6 = smov 1  }
  0x21   : > { %v270_v16 = vsel %vm222_vm3, %v199_v9, 0 }
  0x24   : > { %326 = vrot.lane.b32.xlu0 %v323_v2, %s946_s7  ;;  %214 = vrot.lane.b32.xlu1 %v323_v2, %s947_s8 }
  0x28   : > { %389 = vrot.lane.b32.xlu0 %v742_v1, %s948_s9  ;;  %391 = vrot.lane.b32.xlu1 %v323_v2, %s948_s9 }
  0x2c   : > { %454 = vrot.lane.b32.xlu0 %v742_v1, %s949_s10  ;;  %456 = vrot.lane.b32.xlu1 %v323_v2, %s949_s10 }
  0x92   : > { %v325_v3 = vpop.permute.xlu0 %324  ;;  %v213_v4 = vpop.permute.xlu1 %212 }
  0x96   : > { %v327_v5 = vpop.permute.xlu0 %326  ;;  %v215_v6 = vpop.permute.xlu1 %214 }
  0x97   : > { %v217_v7 = vsel %vm216_vm1, %v213_v4, %v215_v6  ;;  %v329_v8 = vsel %vm328_vm2, %v325_v3, %v327_v5 }
  0x98   : > { %v224_v10 = vsel %vm222_vm3, %v217_v7, 0  ;;  %v334_v11 = vsel %vm222_vm3, %v329_v8, 0 }
  0x99   : > { %766 = vmatpush3.bf16.msra.mxu1 %v224_v10  ;;  %778 = vmatpush3.bf16.msra.mxu0 %v334_v11 }
  0x9a   : > { %v390_v14 = vpop.permute.xlu0 %389  ;;  %v392_v15 = vpop.permute.xlu1 %391  ;;  %783 = vmatprep.subr.bf16.mxu0 %v944_v0  ;;  %771 = vmatprep.subr.bf16.mxu1 %v944_v0 }
  0x9b   : > { %v394_v17 = vsel %vm393_vm4, %v390_v14, %v392_v15 }
  0x9c   : > { %v399_v18 = vsel %vm222_vm3, %v394_v17, 0  ;;  %768 = vmatmul.mubr.msk.bf16.vlgmr.msra.gmra.mrb[0].mxu1 %vm218_vm5, %v737_v12  ;;  %780 = vmatmul.mubr.msk.bf16.vlgmr.msra.gmra.mrb[0].mxu0 %vm218_vm5, %v741_v13 }
  0x9d   : > { %784 = vmatpush3.bf16.msra.mxu0 %v399_v18  ;;  %772 = vmatpush3.bf16.msra.mxu1 %v270_v16 }
  0x9e   : > { %773 = vmatprep.mubr.msk.bf16.mxu1 %vm945_vm0, %v944_v0  ;;  %785 = vmatprep.mubr.msk.bf16.mxu0 %vm945_vm0, %v944_v0  ;;  %v455_v19 = vpop.permute.xlu0 %454  ;;  %v457_v20 = vpop.permute.xlu1 %456 }
  0x9f   : > { %789 = vmatprep.subr.bf16.mxu0 %v944_v0  ;;  %v459_v21 = vsel %vm458_vm6, %v455_v19, %v457_v20 }
  0xa0   : > { %v464_v24 = vsel %vm222_vm3, %v459_v21, 0 }
  0xa8   : > { %774 = vmatmul.mubr.msk.bf16.vlgmr.msra.gmra.mrb[0].mxu1 %vm218_vm5, %v198_v22  ;;  %786 = vmatmul.mubr.msk.bf16.vlgmr.msra.gmra.mrb[0].mxu0 %vm218_vm5, %v744_v23 }
  0xa9   : > { %790 = vmatpush3.bf16.msra.mxu0 %v464_v24  ;;  %791 = vmatprep.mubr.msk.bf16.mxu0 %vm945_vm0, %v944_v0 }
  0xb4   : > { %792 = vmatmul.mubr.msk.bf16.vlgmr.msra.gmra.mrb[0].mxu0 %vm218_vm5, %v747_v25 }
 0x17b   : > { %v306_v26 = vpop.f32.mrb[0].mxu1 }
 0x17c   : > { %v775_v27 = vpop.f32.mrb[1].mxu1 }
 0x17d   : > { %v309_v28 = vpop.f32.mrb[2].mxu1 }
 0x17e   : > { %v776_v29 = vpop.f32.mrb[3].mxu1 }
 0x187   : > { %v500_v30 = vpop.f32.mrb[0].mxu0 }
 0x188   : > { %v1080_v31 = vadd.f32 %v500_v30, %v306_v26  ;;  %v793_v32 = vpop.f32.mrb[1].mxu0 }
 0x189   : > { %v503_v33 = vpop.f32.mrb[2].mxu0 }
 0x18a   : > { %v794_v34 = vpop.f32.mrb[3].mxu0  ;;  %531 = vrot.lane.b32.xlu0 %v1080_v31, %s950_s29  ;;  %v509_v35 = vsel %vm508_vm7, %v1080_v31, 0.0  ;;  %v519_v38 = vmul.f32 %v1080_v31, %v1080_v31 }
 0x18b   : > { %510 = vadd.xlane.f32.xlu1 %v509_v35 }
 0x18c   : > { %v520_v39 = vsel %vm508_vm7, %v519_v38, 0.0 }
 0x19c   : > { %563 = vrot.lane.b32.xlu1 %v1087_v36, %s946_s7 }
 0x1a0   : > { %579 = vrot.lane.b32.xlu1 %v577_v37, %s946_s7 }
 0x1c4   : > { %521 = vadd.xlane.f32.xlu1 %v520_v39  ;;  %v952_v39 = vmov 0  }
 0x1c5   : > { %875 = vset.pattern.permute.xlu1 %v952_v39 }
 0x1fc   : > { %v532_v40 = vpop.permute.xlu0 %531 }
 0x1fd   : > { %v535_v41 = vsel %vm534_vm8, %v532_v40, 0.0 }
 0x1fe   : > { %536 = vadd.xlane.f32.xlu0 %v535_v41 }
 0x214   : > { %547 = vrot.lane.b32.xlu0 %v519_v38, %s950_s29 }
 0x218   : > { %v511_v42 = vpop.xlane.xlu1 %510 }
 0x219   : > { %v512_v43 = vrot.slane %v511_v42, 4 }
 0x21b   : > { %v513_v44 = vadd.f32 %v512_v43, %v511_v42 }
 0x21c   : > { %v564_v49 = vpop.permute.xlu1 %563 }
 0x21d   : > { %v514_v45 = vrot.slane %v513_v44, 2  ;;  %v567_v6 = vsel %vm566_vm9, %v564_v49, 0.0 }
 0x21f   : > { %v515_v46 = vadd.f32 %v514_v45, %v513_v44 }
 0x220   : > { %v580_v50 = vpop.permute.xlu1 %579 }
 0x221   : > { %v516_v47 = vrot.slane %v515_v46, 1  ;;  %v582_v51 = vsel %vm566_vm9, %v580_v50, 0.0 }
 0x222   : > { %583 = vadd.xlane.f32.xlu1 %v582_v51 }
 0x223   : > { %v517_v48 = vadd.f32 %v516_v47, %v515_v46 }
 0x225   : > { %808 = vpush %v517_v48 }
 0x251   : > { %v522_v52 = vpop.xlane.xlu1 %521 }
 0x252   : > { %v523_v53 = vrot.slane %v522_v52, 4 }
 0x254   : > { %v524_v54 = vadd.f32 %v523_v53, %v522_v52 }
 0x256   : > { %v525_v55 = vrot.slane %v524_v54, 2 }
 0x258   : > { %v526_v56 = vadd.f32 %v525_v55, %v524_v54 }
 0x25a   : > { %v527_v57 = vrot.slane %v526_v56, 1 }
 0x25c   : > { %v528_v58 = vadd.f32 %v527_v57, %v526_v56 }
 0x25e   : > { %810 = vpush %v528_v58 }
 0x28b   : > { %v537_v59 = vpop.xlane.xlu0 %536 }
 0x28c   : > { %v538_v60 = vrot.slane %v537_v59, 4  ;;  %v561_v61 = vsub.f32 %v511_v42, %v537_v59  ;;  %v954_v42 = vmov 2  }
 0x28d   : > { %877 = vset.pattern.permute.xlu0 %v954_v42 }
 0x28e   : > { %v539_v62 = vadd.f32 %v538_v60, %v537_v59  ;;  %v594_v63 = vmul.f32 %v561_v61, %v1087_v36 }
 0x28f   : > { %v548_v4 = vpop.permute.xlu0 %547 }
 0x290   : > { %596 = vrot.lane.b32.xlu0 %v594_v63, %s946_s7  ;;  %v540_v0 = vrot.slane %v539_v62, 2  ;;  %v550_v5 = vsel %vm534_vm8, %v548_v4, 0.0  ;;  %s809_s7 = spop %808 }
 0x291   : > { %s811_s8 = spop %810 }
 0x292   : > { %v541_v1 = vadd.f32 %v540_v0, %v539_v62 }
 0x294   : > { %v542_v2 = vrot.slane %v541_v1, 1 }
 0x296   : > { %v543_v3 = vadd.f32 %v542_v2, %v541_v1 }
 0x298   : > { %812 = vpush %v543_v3 }
 0x2af   : > { %551 = vadd.xlane.f32.xlu0 %v550_v5  ;;  %v584_v9 = vpop.xlane.xlu1 %583 }
 0x2b0   : > { %v585_v10 = vrot.slane %v584_v9, 4 }
 0x2b2   : > { %v586_v11 = vadd.f32 %v585_v10, %v584_v9 }
 0x2b3   : > { %568 = vadd.xlane.f32.xlu0 %v567_v6 }
 0x2b4   : > { %v587_v14 = vrot.slane %v586_v11, 2 }
 0x2b6   : > { %v588_v19 = vadd.f32 %v587_v14, %v586_v11 }
 0x2b8   : > { %v589_v24 = vrot.slane %v588_v19, 1 }
 0x2ba   : > { %v590_v28 = vadd.f32 %v589_v24, %v588_v19 }
 0x2c9   : > { %s813_s9 = spop %812 }
 0x2ca   : > { %s545_s13 = ssub.f32 %s809_s7, %s813_s9 }
 0x302   : > { %v597_v7 = vpop.permute.xlu0 %596 }
 0x303   : > { %v599_v8 = vsel %vm566_vm9, %v597_v7, 0.0 }
 0x304   : > { %600 = vadd.xlane.f32.xlu0 %v599_v8 }
 0x31a   : > { %635 = vrot.lane.b32.xlu0 %v1087_v36, %s951_s6 }
 0x33c   : > { %v552_v12 = vpop.xlane.xlu0 %551 }
 0x33d   : > { %v553_v13 = vrot.slane %v552_v12, 4 }
 0x33f   : > { %v554_v15 = vadd.f32 %v553_v13, %v552_v12 }
 0x340   : > { %v569_v16 = vpop.xlane.xlu0 %568 }
 0x341   : > { %v555_v17 = vrot.slane %v554_v15, 2  ;;  %v570_v18 = vrot.slane %v569_v16, 4 }
 0x343   : > { %v571_v20 = vadd.f32 %v570_v18, %v569_v16  ;;  %v556_v21 = vadd.f32 %v555_v17, %v554_v15 }
 0x345   : > { %v572_v22 = vrot.slane %v571_v20, 2  ;;  %v557_v23 = vrot.slane %v556_v21, 1 }
 0x347   : > { %v558_v25 = vadd.f32 %v557_v23, %v556_v21  ;;  %v573_v26 = vadd.f32 %v572_v22, %v571_v20 }
 0x349   : > { %814 = vpush %v558_v25  ;;  %v574_v27 = vrot.slane %v573_v26, 1 }
 0x34b   : > { %v575_v29 = vadd.f32 %v574_v27, %v573_v26 }
 0x34d   : > { %816 = vpush %v575_v29 }
 0x34e   : > { %818 = vpush %v590_v28 }
 0x37a   : > { %s815_s10 = spop %814 }
 0x37b   : > { %s560_s21 = ssub.f32 %s811_s8, %s815_s10  ;;  %s955_s8 = smov 2  }
 0x37e   : > { %s817_s11 = spop %816 }
 0x37f   : > { %s592_s12 = smul.f32 16.0, %s817_s11  ;;  %s819_s15 = spop %818 }
 0x380   : > { %s611_s28 = smul.f32 16.0, %s819_s15 }
 0x381   : > { %s593_s14 = sadd.f32 %s592_s12, %s545_s13 }
 0x383   : > { %s615_s24 = smul.f32 0.015625, %s593_s14 }
 0x385   : > { %s619_s5 = smul.f32 %s615_s24, %s615_s24  ;;  %v628_v45 = vstv %s615_s24 }
 0x386   : > { %v629_v46 = vsub.f32 %v1087_v36, %v628_v45 }
 0x391   : > { %v601_v30 = vpop.xlane.xlu0 %600 }
 0x392   : > { %v602_v32 = vrot.slane %v601_v30, 4 }
 0x394   : > { %v603_v33 = vadd.f32 %v602_v32, %v601_v30 }
 0x395   : > { %v636_v48 = vpop.permute.xlu0 %635 }
 0x396   : > { %v604_v34 = vrot.slane %v603_v33, 2 }
 0x398   : > { %v605_v35 = vadd.f32 %v604_v34, %v603_v33 }
 0x39a   : > { %v606_v37 = vrot.slane %v605_v35, 1 }
 0x39c   : > { %v607_v38 = vadd.f32 %v606_v37, %v605_v35 }
 0x39e   : > { %820 = vpush %v607_v38 }
 0x3cf   : > { %s821_s16 = spop %820 }
 0x3d0   : > { %s609_s23 = smul.f32 2.0, %s821_s16 }
 0x3d2   : > { %s610_s29 = sadd.f32 %s609_s23, %s560_s21 }
 0x3d4   : > { %s612_s30 = sadd.f32 %s611_s28, %s610_s29 }
 0x3d6   : > { %s618_s6 = smul.f32 0.015625, %s612_s30 }
 0x3d8   : > { %s620_s0 = ssub.f32 %s618_s6, %s619_s5 }
 0x3da   : > { %s621_s2 = smax.f32 %s953_s1, %s620_s0  ;;  %s650_s0 = sld [smem:[#allocation2]] }
 0x3db   : > { %s622_s25 = sadd.f32 1e-08, %s621_s2  ;;  %s189_s1 = sand.u32 1, %s934_s18  }
 0x3dc   : > { %s734_s2 = sshll.u32 %s189_s1, 1  ;;  %s658_s14 = scalar_lea.sflag [#allocation4], %s189_s1 }
 0x3dd   : > { %v623_v40 = vstv %s622_s25  ;;  %s751_s25 = sshll.u32 %s1006_s3, 5  ;;  %s191_s9 = scalar_lea.vmem [#allocation3], %s734_s2 }
 0x3de   : > { %878 = vrsqrt.f32 %v623_v40  ;;  %s671_s10 = sshll.u32 %s191_s9, 4  ;;  %s1112_s13 = scalar_lea.hbm %s1158_s4, %s751_s25  ;;  %s1114_s10 = int_to_ptr.vmem [resolvable:$true] %s671_s10 }
 0x3df   : > { %s880_s15 = scalar_lea.vmem %s1114_s10, 32  ;;  %s956_s3 = smov [#allocation3]  }
 0x3e0   : > { %v652_v53 = vstv %s650_s0  ;;  %p881_p11 = scmp.ne.s32.totalorder %s1114_s10, %s880_s15  ;;  %s884_s16 = sshll.u32 %s956_s3, 4  ;;  %s885_s16 = int_to_ptr.vmem [resolvable:$false] %s884_s16 }
 0x3e1   : > { %s886_s21 = scalar_lea.vmem %s885_s16, 64  ;;  %p887_p0 = scmp.lt.s32.totalorder %s1114_s10, %s885_s16 }
 0x3e2   : > { %p882_p12 = pnand %p881_p11, %p1023_p5  ;;  %p888_p1 = scmp.lt.s32.totalorder %s886_s21, %s880_s15 }
 0x3e4   : > { %p883_p13 = pneg %p882_p12  ;;  %p889_p2 = por %p888_p1, %p887_p0 }
 0x3e6   : > { %p890_p3 = pnand %p889_p2, %p883_p13 }
 0x3e8   : > { %v879_v41 = vpop.eup %878 }
 0x3e9   : > { %822 = vpush %v879_v41 }
 0x41a   : > { %s823_s7 = spop %822 }
 0x41b   : > { %v626_v43 = vstv %s823_s7 }
 0x41c   : > { %v627_v44 = vmul.f32 %v626_v43, %v1087_v36 }
 0x41e   : > { %631 = vrot.lane.b32.xlu1 %v627_v44, %s955_s8 }
 0x422   : > { %640 = vperm.xlu1 %875, %v627_v44  }
 0x426   : > { %876 = vset.pattern.permute.xlu1 %v954_v42 }
 0x490   : > { %v632_v47 = vpop.permute.xlu1 %631 }
 0x491   : > { %v634_v49 = vmul.f32 %v632_v47, %v629_v46 }
 0x493   : > { %v638_v50 = vadd.f32 %v636_v48, %v634_v49 }
 0x495   : > { %646 = vperm.xlu1 %876, %v638_v50  }
 0x4a1   : > { %v641_v51 = vpop.permute.xlu1 %640 }
 0x4a2   : > { %v643_v52 = vmul.f32 %v1080_v31, %v641_v51 }
 0x514   : > { %v647_v54 = vpop.permute.xlu1 %646 }
 0x515   : > { %v649_v55 = vadd.f32 %v647_v54, %v643_v52 }
 0x517   : > { %vm651_vm10 = vcmp.ge.f32.partialorder %v649_v55, 0.0  ;;  %v653_v56 = vmul.f32 %v652_v53, %v649_v55 }
 0x519   : > { %v654_v36 = vsel %vm651_vm10, %v649_v55, %v653_v56 }
 0x51a   : > { %v655_v57 = vpack.c.bf16 %v654_v36, %v654_v36 }
 0x51c   : > { %656 = vst [vmem:[%s191_s9] sm:$0x3] %v655_v57 }
 0x51d   : > { %893 = shalt.err (!%p890_p3)
}
 0x51e   : > { %s894_s23 = scalar_lea.hbm %s1112_s13, 32  ;;  %s898_s29 = scalar_lea.hbm %s1158_s4, 64 }
 0x51f   : > { %p895_p4 = scmp.ne.s32.totalorder %s1112_s13, %s894_s23  ;;  %p899_p9 = scmp.lt.u32.totalorder %s1112_s13, %s1158_s4 }
 0x520   : > { %p900_p10 = scmp.lt.u32.totalorder %s898_s29, %s894_s23  ;;  %p902_p12 = scmp.lt.u32.totalorder %s894_s23, %s1112_s13 }
 0x521   : > { %p896_p7 = pnand %p895_p4, %p1023_p5 }
 0x522   : > { %p901_p11 = por %p900_p10, %p899_p9 }
 0x523   : > { %p897_p8 = pneg %p896_p7 }
 0x524   : > { %p903_p13 = por %p902_p12, %p901_p11 }
 0x526   : > { %p904_p0 = pnand %p903_p13, %p897_p8 }
 0x528   : > { %907 = shalt.err (!%p904_p0)
}
 0x529   : > { %824 = dma.vmem_to_hbm [thread:$0]  (%p1023_p5), %s1114_s10, 32, %s1112_s13, %s658_s14  }
 0x52a PF: > { %p830_p1 = scmp.ge.s32.totalorder %s942_s20, 2  ;;  %s683_s6 = sand.u32 1, %s930_s17  }
 0x52b   : > { %s684_s7 = scalar_lea.sflag [#allocation4], %s683_s6 }
 0x52c   : > { %p827_p2 = pnand %p830_p1, %p1027_p6 }
 0x52e   : > { %925 = dma.done.wait (!%p827_p2), %s684_s7, 32  }
 0x52f   : > { %927 = vsyncadd (!%p827_p2), %s684_s7, 4294967264  ;;  %s1168_s8 = sld [smem:[#allocation6_spill]]  ;;  %p15_p3 = scmp.ge.s32.totalorder %s1010_s22, 4  }
 0x530   : > { %s1169_s17 = smov %s934_s18  ;;  %s1170_s18 = smov %s938_s19 }
 0x531   : > { %s1172_s20 = smov %s1010_s22  ;;  %17 = sbr.rel (!%p15_p3) target bundleno = 8 (0x8), region = 75 }
 0x535   : > { %s1171_s19 = smov %s1168_s8 }
 0x538   :  { %689 = vsyncpa [#allocation4], 1 }
 0x539   :  { %691 = vsyncpa [#allocation4 + $0x1], 1 }

// kernel: tpu_custom_call.1
= control target key start
LH: loop header
LB: loop body
LE: loop exit
PB: predicated region body
PF: predicated region fallthrough
CT: control target
= control target key end

     0   :  { %s1154_s0 = inlined_call_operand.vmem [shape: bf16[2,4,256], index: 0, kind: input, shape index: {}]   ;;  %s1155_s1 = inlined_call_operand.vmem [shape: bf16[5,4,4], index: 1, kind: input, shape index: {}]   ;;  %s1156_s2 = inlined_call_operand.vmem [shape: f32[4,4], index: 2, kind: input, shape index: {}]   ;;  %s1157_s3 = inlined_call_operand.<no memory space> [shape: f32[1,1], index: 3, kind: input, shape index: {}]   ;;  %s1158_s4 = inlined_call_operand.hbm [shape: bf16[2,4,128], index: 4, kind: output, shape index: {}]  }
   0x1   :  { %1159 = sst [smem:[#allocation7_spill]] %s1154_s0 }
   0x2   :  { %1160 = sst [smem:[#allocation8_spill]] %s1155_s1 }
   0x3   :  { %1161 = sst [smem:[#allocation9_spill]] %s1156_s2 }
   0x4   :  { %9 = sst [smem:[#allocation2]] %s1157_s3 }
   0x5   :  { %10 = vsyncpa [#allocation4], 0 }
   0x6   :  { %12 = vsyncpa [#allocation4 + $0x1], 0  ;;  %s985_s17 = smov 0   ;;  %s987_s18 = smov 0  }
   0x7   :  { %s989_s19 = smov 0   ;;  %s991_s20 = smov 0  }
   0x8 LB: > { %s1006_s3 = sadd.s32 4294967295, %s942_s20   ;;  %s730_s21 = sadd.s32 4294967294, %s942_s20   ;;  %s942_s20 = sphi %s991_s20, %s1172_s20   ;;  %s938_s19 = sphi %s989_s19, %s1171_s19   ;;  %s934_s18 = sphi %s987_s18, %s1170_s18   ;;  %s930_s17 = sphi %s985_s17, %s1169_s17  }
   0x9   : > { %s1010_s22 = sadd.s32 1, %s942_s20   ;;  %s114_s23 = sadd.s32 1, %s938_s19 }
   0xa   : > { %s111_s24 = ssub.s32 %s942_s20, %s1010_s22  ;;  %p124_p0 = scmp.ne.s32.totalorder %s938_s19, %s934_s18 }
   0xb   : > { %p112_p1 = scmp.eq.s32.totalorder %s111_s24, 0  ;;  %p125_p2 = scmp.eq.s32.totalorder %s1006_s3, 1 }
   0xc   : > { %p130_p3 = scmp.ne.s32.totalorder %s934_s18, %s930_s17  ;;  %p131_p4 = scmp.eq.s32.totalorder %s730_s21, 1 }
   0xd   : > { %s1021_s25 = scalar_select %p112_p1, %s938_s19, %s114_s23  }
   0xe   : > { %p1023_p5 = por %p125_p2, %p124_p0  ;;  %p1027_p6 = por %p131_p4, %p130_p3 }
   0xf   : > { %1162 = sst [smem:[#allocation6_spill]] %s1021_s25  ;;  %p733_p7 = scmp.ge.s32.totalorder %s942_s20, 1 }
  0x10   : > { %p166_p8 = scmp.lt.s32.totalorder %s942_s20, 3 }
  0x12   : > { %p167_p9 = pnand %p733_p7, %p166_p8 }
  0x13   : > { %p192_p10 = scmp.lt.s32.totalorder (!%p167_p9), %s1006_s3, 1  ;;  %v944_v0 = vmov (!%p167_p9), 0.0   ;;  %vm945_vm0 = vmmov (!%p167_p9), 0   ;;  %s1165_s0 = sld [smem:[#allocation7_spill]] (!%p167_p9)  ;;  %vm216_vm1 = vcmask (!%p167_p9), 1039360   ;;  %vm328_vm2 = vcmask (!%p167_p9), 1031168  }
  0x14   : > { %170 = sbr.rel (%p167_p9) target bundleno = 1322 (0x52a), region = 36  ;;  %765 = vmatprep.subr.bf16.mxu1 (!%p167_p9), %v944_v0  ;;  %777 = vmatprep.subr.bf16.mxu0 (!%p167_p9), %v944_v0  ;;  %s946_s7 = smov (!%p167_p9), 126   ;;  %vm222_vm3 = vcmask (!%p167_p9), 1041408   ;;  %vm393_vm4 = vcmask (!%p167_p9), 1022976   ;;  %vm218_vm5 = vcmask (!%p167_p9), 31744   ;;  %vm458_vm6 = vcmask (!%p167_p9), 1014784  }
  0x15   : > { %767 = vmatprep.mubr.msk.bf16.mxu1 (!%p167_p9), %vm945_vm0, %v944_v0  ;;  %779 = vmatprep.mubr.msk.bf16.mxu0 (!%p167_p9), %vm945_vm0, %v944_v0  ;;  %s947_s8 = smov (!%p167_p9), 127   ;;  %s948_s9 = smov (!%p167_p9), 125   ;;  %vm508_vm7 = vcmask (!%p167_p9), 1043456   ;;  %vm534_vm8 = vcmask (!%p167_p9), 27648   ;;  %vm566_vm9 = vcmask (!%p167_p9), 3072  }
  0x16   : > { %s949_s10 = smov (!%p167_p9), 124   ;;  %s1166_s1 = sld [smem:[#allocation8_spill]] (!%p167_p9) }
  0x17   : > { %s1167_s2 = sld [smem:[#allocation9_spill]] (!%p167_p9) }
  0x1b   : > { %s193_s28 = scalar_select %p192_p10, %s1006_s3, 1 }
  0x1c   : > { %v737_v12 = vld [vmem:[%s1166_s1 + $0x2] sm:$0x3]  ;;  %v741_v13 = vld [vmem:[%s1166_s1 + $0x4] sm:$0x3]  ;;  %v198_v22 = vld [vmem:[%s1166_s1] sm:$0x3] }
  0x1d   : > { %s754_s29 = sshll.u32 %s193_s28, 2  ;;  %v744_v23 = vld [vmem:[%s1166_s1 + $0x6] sm:$0x3]  ;;  %v747_v25 = vld [vmem:[%s1166_s1 + $0x8] sm:$0x3]  ;;  %s953_s1 = smov 0.0  }
  0x1e   : > { %s196_s6 = scalar_lea.vmem %s1165_s0, %s754_s29  ;;  %s950_s29 = smov 112   ;;  %v1087_v36 = vld [vmem:[%s1167_s2] sm:$0xf] }
  0x1f   : > { %v742_v1 = vld.sshfl [vmem:[%s196_s6] sm:$0x33 pattern:$0x76325410]  ;;  %v577_v37 = vmul.f32 %v1087_v36, %v1087_v36 }
  0x20   : > { %324 = vrot.lane.b32.xlu0 %v742_v1, %s946_s7  ;;  %v323_v2 = vcombine.high %v742_v1, %v742_v1  ;;  %212 = vrot.lane.b32.xlu1 %v742_v1, %s947_s8  ;;  %v199_v9 = vld [vmem:[%s196_s6] sm:$0x3]  ;;  %s951_s6 = smov 1  }
  0x21   : > { %v270_v16 = vsel %vm222_vm3, %v199_v9, 0 }
  0x24   : > { %326 = vrot.lane.b32.xlu0 %v323_v2, %s946_s7  ;;  %214 = vrot.lane.b32.xlu1 %v323_v2, %s947_s8 }
  0x28   : > { %389 = vrot.lane.b32.xlu0 %v742_v1, %s948_s9  ;;  %391 = vrot.lane.b32.xlu1 %v323_v2, %s948_s9 }
  0x2c   : > { %454 = vrot.lane.b32.xlu0 %v742_v1, %s949_s10  ;;  %456 = vrot.lane.b32.xlu1 %v323_v2, %s949_s10 }
  0x92   : > { %v325_v3 = vpop.permute.xlu0 %324  ;;  %v213_v4 = vpop.permute.xlu1 %212 }
  0x96   : > { %v327_v5 = vpop.permute.xlu0 %326  ;;  %v215_v6 = vpop.permute.xlu1 %214 }
  0x97   : > { %v217_v7 = vsel %vm216_vm1, %v213_v4, %v215_v6  ;;  %v329_v8 = vsel %vm328_vm2, %v325_v3, %v327_v5 }
  0x98   : > { %v224_v10 = vsel %vm222_vm3, %v217_v7, 0  ;;  %v334_v11 = vsel %vm222_vm3, %v329_v8, 0 }
  0x99   : > { %766 = vmatpush3.bf16.msra.mxu1 %v224_v10  ;;  %778 = vmatpush3.bf16.msra.mxu0 %v334_v11 }
  0x9a   : > { %v390_v14 = vpop.permute.xlu0 %389  ;;  %v392_v15 = vpop.permute.xlu1 %391  ;;  %783 = vmatprep.subr.bf16.mxu0 %v944_v0  ;;  %771 = vmatprep.subr.bf16.mxu1 %v944_v0 }
  0x9b   : > { %v394_v17 = vsel %vm393_vm4, %v390_v14, %v392_v15 }
  0x9c   : > { %v399_v18 = vsel %vm222_vm3, %v394_v17, 0  ;;  %768 = vmatmul.mubr.msk.bf16.vlgmr.msra.gmra.mrb[0].mxu1 %vm218_vm5, %v737_v12  ;;  %780 = vmatmul.mubr.msk.bf16.vlgmr.msra.gmra.mrb[0].mxu0 %vm218_vm5, %v741_v13 }
  0x9d   : > { %784 = vmatpush3.bf16.msra.mxu0 %v399_v18  ;;  %772 = vmatpush3.bf16.msra.mxu1 %v270_v16 }
  0x9e   : > { %773 = vmatprep.mubr.msk.bf16.mxu1 %vm945_vm0, %v944_v0  ;;  %785 = vmatprep.mubr.msk.bf16.mxu0 %vm945_vm0, %v944_v0  ;;  %v455_v19 = vpop.permute.xlu0 %454  ;;  %v457_v20 = vpop.permute.xlu1 %456 }
  0x9f   : > { %789 = vmatprep.subr.bf16.mxu0 %v944_v0  ;;  %v459_v21 = vsel %vm458_vm6, %v455_v19, %v457_v20 }
  0xa0   : > { %v464_v24 = vsel %vm222_vm3, %v459_v21, 0 }
  0xa8   : > { %774 = vmatmul.mubr.msk.bf16.vlgmr.msra.gmra.mrb[0].mxu1 %vm218_vm5, %v198_v22  ;;  %786 = vmatmul.mubr.msk.bf16.vlgmr.msra.gmra.mrb[0].mxu0 %vm218_vm5, %v744_v23 }
  0xa9   : > { %790 = vmatpush3.bf16.msra.mxu0 %v464_v24  ;;  %791 = vmatprep.mubr.msk.bf16.mxu0 %vm945_vm0, %v944_v0 }
  0xb4   : > { %792 = vmatmul.mubr.msk.bf16.vlgmr.msra.gmra.mrb[0].mxu0 %vm218_vm5, %v747_v25 }
 0x17b   : > { %v306_v26 = vpop.f32.mrb[0].mxu1 }
 0x17c   : > { %v775_v27 = vpop.f32.mrb[1].mxu1 }
 0x17d   : > { %v309_v28 = vpop.f32.mrb[2].mxu1 }
 0x17e   : > { %v776_v29 = vpop.f32.mrb[3].mxu1 }
 0x187   : > { %v500_v30 = vpop.f32.mrb[0].mxu0 }
 0x188   : > { %v1080_v31 = vadd.f32 %v500_v30, %v306_v26  ;;  %v793_v32 = vpop.f32.mrb[1].mxu0 }
 0x189   : > { %v503_v33 = vpop.f32.mrb[2].mxu0 }
 0x18a   : > { %v794_v34 = vpop.f32.mrb[3].mxu0  ;;  %531 = vrot.lane.b32.xlu0 %v1080_v31, %s950_s29  ;;  %v509_v35 = vsel %vm508_vm7, %v1080_v31, 0.0  ;;  %v519_v38 = vmul.f32 %v1080_v31, %v1080_v31 }
 0x18b   : > { %510 = vadd.xlane.f32.xlu1 %v509_v35 }
 0x18c   : > { %v520_v39 = vsel %vm508_vm7, %v519_v38, 0.0 }
 0x19c   : > { %563 = vrot.lane.b32.xlu1 %v1087_v36, %s946_s7 }
 0x1a0   : > { %579 = vrot.lane.b32.xlu1 %v577_v37, %s946_s7 }
 0x1c4   : > { %521 = vadd.xlane.f32.xlu1 %v520_v39  ;;  %v952_v39 = vmov 0  }
 0x1c5   : > { %875 = vset.pattern.permute.xlu1 %v952_v39 }
 0x1fc   : > { %v532_v40 = vpop.permute.xlu0 %531 }
 0x1fd   : > { %v535_v41 = vsel %vm534_vm8, %v532_v40, 0.0 }
 0x1fe   : > { %536 = vadd.xlane.f32.xlu0 %v535_v41 }
 0x214   : > { %547 = vrot.lane.b32.xlu0 %v519_v38, %s950_s29 }
 0x218   : > { %v511_v42 = vpop.xlane.xlu1 %510 }
 0x219   : > { %v512_v43 = vrot.slane %v511_v42, 4 }
 0x21b   : > { %v513_v44 = vadd.f32 %v512_v43, %v511_v42 }
 0x21c   : > { %v564_v49 = vpop.permute.xlu1 %563 }
 0x21d   : > { %v514_v45 = vrot.slane %v513_v44, 2  ;;  %v567_v6 = vsel %vm566_vm9, %v564_v49, 0.0 }
 0x21f   : > { %v515_v46 = vadd.f32 %v514_v45, %v513_v44 }
 0x220   : > { %v580_v50 = vpop.permute.xlu1 %579 }
 0x221   : > { %v516_v47 = vrot.slane %v515_v46, 1  ;;  %v582_v51 = vsel %vm566_vm9, %v580_v50, 0.0 }
 0x222   : > { %583 = vadd.xlane.f32.xlu1 %v582_v51 }
 0x223   : > { %v517_v48 = vadd.f32 %v516_v47, %v515_v46 }
 0x225   : > { %808 = vpush %v517_v48 }
 0x251   : > { %v522_v52 = vpop.xlane.xlu1 %521 }
 0x252   : > { %v523_v53 = vrot.slane %v522_v52, 4 }
 0x254   : > { %v524_v54 = vadd.f32 %v523_v53, %v522_v52 }
 0x256   : > { %v525_v55 = vrot.slane %v524_v54, 2 }
 0x258   : > { %v526_v56 = vadd.f32 %v525_v55, %v524_v54 }
 0x25a   : > { %v527_v57 = vrot.slane %v526_v56, 1 }
 0x25c   : > { %v528_v58 = vadd.f32 %v527_v57, %v526_v56 }
 0x25e   : > { %810 = vpush %v528_v58 }
 0x28b   : > { %v537_v59 = vpop.xlane.xlu0 %536 }
 0x28c   : > { %v538_v60 = vrot.slane %v537_v59, 4  ;;  %v561_v61 = vsub.f32 %v511_v42, %v537_v59  ;;  %v954_v42 = vmov 2  }
 0x28d   : > { %877 = vset.pattern.permute.xlu0 %v954_v42 }
 0x28e   : > { %v539_v62 = vadd.f32 %v538_v60, %v537_v59  ;;  %v594_v63 = vmul.f32 %v561_v61, %v1087_v36 }
 0x28f   : > { %v548_v4 = vpop.permute.xlu0 %547 }
 0x290   : > { %596 = vrot.lane.b32.xlu0 %v594_v63, %s946_s7  ;;  %v540_v0 = vrot.slane %v539_v62, 2  ;;  %v550_v5 = vsel %vm534_vm8, %v548_v4, 0.0  ;;  %s809_s7 = spop %808 }
 0x291   : > { %s811_s8 = spop %810 }
 0x292   : > { %v541_v1 = vadd.f32 %v540_v0, %v539_v62 }
 0x294   : > { %v542_v2 = vrot.slane %v541_v1, 1 }
 0x296   : > { %v543_v3 = vadd.f32 %v542_v2, %v541_v1 }
 0x298   : > { %812 = vpush %v543_v3 }
 0x2af   : > { %551 = vadd.xlane.f32.xlu0 %v550_v5  ;;  %v584_v9 = vpop.xlane.xlu1 %583 }
 0x2b0   : > { %v585_v10 = vrot.slane %v584_v9, 4 }
 0x2b2   : > { %v586_v11 = vadd.f32 %v585_v10, %v584_v9 }
 0x2b3   : > { %568 = vadd.xlane.f32.xlu0 %v567_v6 }
 0x2b4   : > { %v587_v14 = vrot.slane %v586_v11, 2 }
 0x2b6   : > { %v588_v19 = vadd.f32 %v587_v14, %v586_v11 }
 0x2b8   : > { %v589_v24 = vrot.slane %v588_v19, 1 }
 0x2ba   : > { %v590_v28 = vadd.f32 %v589_v24, %v588_v19 }
 0x2c9   : > { %s813_s9 = spop %812 }
 0x2ca   : > { %s545_s13 = ssub.f32 %s809_s7, %s813_s9 }
 0x302   : > { %v597_v7 = vpop.permute.xlu0 %596 }
 0x303   : > { %v599_v8 = vsel %vm566_vm9, %v597_v7, 0.0 }
 0x304   : > { %600 = vadd.xlane.f32.xlu0 %v599_v8 }
 0x31a   : > { %635 = vrot.lane.b32.xlu0 %v1087_v36, %s951_s6 }
 0x33c   : > { %v552_v12 = vpop.xlane.xlu0 %551 }
 0x33d   : > { %v553_v13 = vrot.slane %v552_v12, 4 }
 0x33f   : > { %v554_v15 = vadd.f32 %v553_v13, %v552_v12 }
 0x340   : > { %v569_v16 = vpop.xlane.xlu0 %568 }
 0x341   : > { %v555_v17 = vrot.slane %v554_v15, 2  ;;  %v570_v18 = vrot.slane %v569_v16, 4 }
 0x343   : > { %v571_v20 = vadd.f32 %v570_v18, %v569_v16  ;;  %v556_v21 = vadd.f32 %v555_v17, %v554_v15 }
 0x345   : > { %v572_v22 = vrot.slane %v571_v20, 2  ;;  %v557_v23 = vrot.slane %v556_v21, 1 }
 0x347   : > { %v558_v25 = vadd.f32 %v557_v23, %v556_v21  ;;  %v573_v26 = vadd.f32 %v572_v22, %v571_v20 }
 0x349   : > { %814 = vpush %v558_v25  ;;  %v574_v27 = vrot.slane %v573_v26, 1 }
 0x34b   : > { %v575_v29 = vadd.f32 %v574_v27, %v573_v26 }
 0x34d   : > { %816 = vpush %v575_v29 }
 0x34e   : > { %818 = vpush %v590_v28 }
 0x37a   : > { %s815_s10 = spop %814 }
 0x37b   : > { %s560_s21 = ssub.f32 %s811_s8, %s815_s10  ;;  %s955_s8 = smov 2  }
 0x37e   : > { %s817_s11 = spop %816 }
 0x37f   : > { %s592_s12 = smul.f32 16.0, %s817_s11  ;;  %s819_s15 = spop %818 }
 0x380   : > { %s611_s28 = smul.f32 16.0, %s819_s15 }
 0x381   : > { %s593_s14 = sadd.f32 %s592_s12, %s545_s13 }
 0x383   : > { %s615_s24 = smul.f32 0.015625, %s593_s14 }
 0x385   : > { %s619_s5 = smul.f32 %s615_s24, %s615_s24  ;;  %v628_v45 = vstv %s615_s24 }
 0x386   : > { %v629_v46 = vsub.f32 %v1087_v36, %v628_v45 }
 0x391   : > { %v601_v30 = vpop.xlane.xlu0 %600 }
 0x392   : > { %v602_v32 = vrot.slane %v601_v30, 4 }
 0x394   : > { %v603_v33 = vadd.f32 %v602_v32, %v601_v30 }
 0x395   : > { %v636_v48 = vpop.permute.xlu0 %635 }
 0x396   : > { %v604_v34 = vrot.slane %v603_v33, 2 }
 0x398   : > { %v605_v35 = vadd.f32 %v604_v34, %v603_v33 }
 0x39a   : > { %v606_v37 = vrot.slane %v605_v35, 1 }
 0x39c   : > { %v607_v38 = vadd.f32 %v606_v37, %v605_v35 }
 0x39e   : > { %820 = vpush %v607_v38 }
 0x3cf   : > { %s821_s16 = spop %820 }
 0x3d0   : > { %s609_s23 = smul.f32 2.0, %s821_s16 }
 0x3d2   : > { %s610_s29 = sadd.f32 %s609_s23, %s560_s21 }
 0x3d4   : > { %s612_s30 = sadd.f32 %s611_s28, %s610_s29 }
 0x3d6   : > { %s618_s6 = smul.f32 0.015625, %s612_s30 }
 0x3d8   : > { %s620_s0 = ssub.f32 %s618_s6, %s619_s5 }
 0x3da   : > { %s621_s2 = smax.f32 %s953_s1, %s620_s0  ;;  %s650_s0 = sld [smem:[#allocation2]] }
 0x3db   : > { %s622_s25 = sadd.f32 1e-08, %s621_s2  ;;  %s189_s1 = sand.u32 1, %s934_s18  }
 0x3dc   : > { %s734_s2 = sshll.u32 %s189_s1, 1  ;;  %s658_s14 = scalar_lea.sflag [#allocation4], %s189_s1 }
 0x3dd   : > { %v623_v40 = vstv %s622_s25  ;;  %s751_s25 = sshll.u32 %s1006_s3, 5  ;;  %s191_s9 = scalar_lea.vmem [#allocation3], %s734_s2 }
 0x3de   : > { %878 = vrsqrt.f32 %v623_v40  ;;  %s671_s10 = sshll.u32 %s191_s9, 4  ;;  %s1112_s13 = scalar_lea.hbm %s1158_s4, %s751_s25  ;;  %s1114_s10 = int_to_ptr.vmem [resolvable:$true] %s671_s10 }
 0x3df   : > { %s880_s15 = scalar_lea.vmem %s1114_s10, 32  ;;  %s956_s3 = smov [#allocation3]  }
 0x3e0   : > { %v652_v53 = vstv %s650_s0  ;;  %p881_p11 = scmp.ne.s32.totalorder %s1114_s10, %s880_s15  ;;  %s884_s16 = sshll.u32 %s956_s3, 4  ;;  %s885_s16 = int_to_ptr.vmem [resolvable:$false] %s884_s16 }
 0x3e1   : > { %s886_s21 = scalar_lea.vmem %s885_s16, 64  ;;  %p887_p0 = scmp.lt.s32.totalorder %s1114_s10, %s885_s16 }
 0x3e2   : > { %p882_p12 = pnand %p881_p11, %p1023_p5  ;;  %p888_p1 = scmp.lt.s32.totalorder %s886_s21, %s880_s15 }
 0x3e4   : > { %p883_p13 = pneg %p882_p12  ;;  %p889_p2 = por %p888_p1, %p887_p0 }
 0x3e6   : > { %p890_p3 = pnand %p889_p2, %p883_p13 }
 0x3e8   : > { %v879_v41 = vpop.eup %878 }
 0x3e9   : > { %822 = vpush %v879_v41 }
 0x41a   : > { %s823_s7 = spop %822 }
 0x41b   : > { %v626_v43 = vstv %s823_s7 }
 0x41c   : > { %v627_v44 = vmul.f32 %v626_v43, %v1087_v36 }
 0x41e   : > { %631 = vrot.lane.b32.xlu1 %v627_v44, %s955_s8 }
 0x422   : > { %640 = vperm.xlu1 %875, %v627_v44  }
 0x426   : > { %876 = vset.pattern.permute.xlu1 %v954_v42 }
 0x490   : > { %v632_v47 = vpop.permute.xlu1 %631 }
 0x491   : > { %v634_v49 = vmul.f32 %v632_v47, %v629_v46 }
 0x493   : > { %v638_v50 = vadd.f32 %v636_v48, %v634_v49 }
 0x495   : > { %646 = vperm.xlu1 %876, %v638_v50  }
 0x4a1   : > { %v641_v51 = vpop.permute.xlu1 %640 }
 0x4a2   : > { %v643_v52 = vmul.f32 %v1080_v31, %v641_v51 }
 0x514   : > { %v647_v54 = vpop.permute.xlu1 %646 }
 0x515   : > { %v649_v55 = vadd.f32 %v647_v54, %v643_v52 }
 0x517   : > { %vm651_vm10 = vcmp.ge.f32.partialorder %v649_v55, 0.0  ;;  %v653_v56 = vmul.f32 %v652_v53, %v649_v55 }
 0x519   : > { %v654_v36 = vsel %vm651_vm10, %v649_v55, %v653_v56 }
 0x51a   : > { %v655_v57 = vpack.c.bf16 %v654_v36, %v654_v36 }
 0x51c   : > { %656 = vst [vmem:[%s191_s9] sm:$0x3] %v655_v57 }
 0x51d   : > { %893 = shalt.err (!%p890_p3)
}
 0x51e   : > { %s894_s23 = scalar_lea.hbm %s1112_s13, 32  ;;  %s898_s29 = scalar_lea.hbm %s1158_s4, 64 }
 0x51f   : > { %p895_p4 = scmp.ne.s32.totalorder %s1112_s13, %s894_s23  ;;  %p899_p9 = scmp.lt.u32.totalorder %s1112_s13, %s1158_s4 }
 0x520   : > { %p900_p10 = scmp.lt.u32.totalorder %s898_s29, %s894_s23  ;;  %p902_p12 = scmp.lt.u32.totalorder %s894_s23, %s1112_s13 }
 0x521   : > { %p896_p7 = pnand %p895_p4, %p1023_p5 }
 0x522   : > { %p901_p11 = por %p900_p10, %p899_p9 }
 0x523   : > { %p897_p8 = pneg %p896_p7 }
 0x524   : > { %p903_p13 = por %p902_p12, %p901_p11 }
 0x526   : > { %p904_p0 = pnand %p903_p13, %p897_p8 }
 0x528   : > { %907 = shalt.err (!%p904_p0)
}
 0x529   : > { %824 = dma.vmem_to_hbm [thread:$0]  (%p1023_p5), %s1114_s10, 32, %s1112_s13, %s658_s14  }
 0x52a PF: > { %p830_p1 = scmp.ge.s32.totalorder %s942_s20, 2  ;;  %s683_s6 = sand.u32 1, %s930_s17  }
 0x52b   : > { %s684_s7 = scalar_lea.sflag [#allocation4], %s683_s6 }
 0x52c   : > { %p827_p2 = pnand %p830_p1, %p1027_p6 }
 0x52e   : > { %925 = dma.done.wait (!%p827_p2), %s684_s7, 32  }
 0x52f   : > { %927 = vsyncadd (!%p827_p2), %s684_s7, 4294967264  ;;  %s1168_s8 = sld [smem:[#allocation6_spill]]  ;;  %p15_p3 = scmp.ge.s32.totalorder %s1010_s22, 4  }
 0x530   : > { %s1169_s17 = smov %s934_s18  ;;  %s1170_s18 = smov %s938_s19 }
 0x531   : > { %s1172_s20 = smov %s1010_s22  ;;  %17 = sbr.rel (!%p15_p3) target bundleno = 8 (0x8), region = 75 }
 0x535   : > { %s1171_s19 = smov %s1168_s8 }
 0x538   :  { %689 = vsyncpa [#allocation4], 1 }
 0x539   :  { %691 = vsyncpa [#allocation4 + $0x1], 1 }

</bundles_post_ra>
